<compile_context>
chip_gen: v7x
topology: tpu7x:2x2x1
jax: 0.10.0
libtpu: 0.0.40
codegen_flags: <defaults>
</compile_context>

<pallas_src>
import jax
import jax.numpy as jnp
from jax.experimental import pallas as pl
from jax.experimental.pallas import tpu as pltpu

K_IN = 773          # raw input features (chess board encoding)
K_PAD = 1024        # lane/MXU-aligned padded input width
HIDDEN = 256
DEFAULT_TB = 256    # batch tile: multiple of 256 -> full MXU M-tiles on v6e/v7x


def _round_up(n, m):
    return ((n + m - 1) // m) * m


def chessnet_kernel(x_ref, w1_ref, b1_ref, w2_ref, b2_ref, w3_ref, b3_ref, o_ref):
    # Layer 1: (TB, 1024)bf16 @ (1024, 256)bf16 -> f32 acc, + bias, ReLU
    h1 = jnp.dot(x_ref[...], w1_ref[...], preferred_element_type=jnp.float32)
    h1 = jnp.maximum(h1 + b1_ref[...], 0.0)

    # Layer 2: (TB, 256)bf16 @ (256, 256)bf16 -> f32 acc, + bias, ReLU
    h2 = jnp.dot(h1.astype(jnp.bfloat16), w2_ref[...],
                 preferred_element_type=jnp.float32)
    h2 = jnp.maximum(h2 + b2_ref[...], 0.0)

    # Layer 3: N=1 output -> VPU multiply + cross-lane reduce (no MXU pass).
    w3_row = w3_ref[...].astype(jnp.float32)                 # (1, 256)
    h3 = jnp.sum(h2 * w3_row, axis=-1, keepdims=True)        # (TB, 1)

    o_ref[...] = jnp.tanh(h3 + b3_ref[0, 0]).astype(o_ref.dtype)


def chessnet_forward(x, params, *, block_b=DEFAULT_TB):
    w1, b1, w2, b2, w3, b3 = params
    B = x.shape[0]

    # Batch tile: full MXU-width tiles for large B, minimal padding for small B.
    tb = min(block_b, max(8, _round_up(B, 8)))
    b_pad = _round_up(B, tb)

    # Zero-pad batch -> multiple of tb and features 773 -> 1024 (exact math),
    # cast activations to bf16 for the native MXU path.
    x_p = jnp.pad(x, ((0, b_pad - B), (0, K_PAD - x.shape[1]))).astype(jnp.bfloat16)

    grid = (b_pad // tb,)
    # Weights/biases: constant block index -> DMA'd once, stay VMEM-resident.
    resident = lambda a: pl.BlockSpec(a.shape, lambda i: (0,) * a.ndim)

    out = pl.pallas_call(
        chessnet_kernel,
        out_shape=jax.ShapeDtypeStruct((b_pad, 1), jnp.float32),
        grid_spec=pltpu.PrefetchScalarGridSpec(
            num_scalar_prefetch=0,
            grid=grid,
            in_specs=[
                pl.BlockSpec((tb, K_PAD), lambda i: (i, 0)),      # x: streamed
                resident(w1), resident(b1),
                resident(w2), resident(b2),
                resident(w3),
                pl.BlockSpec(memory_space=pltpu.MemorySpace.SMEM),  # b3 scalar
            ],
            out_specs=pl.BlockSpec((tb, 1), lambda i: (i, 0)),
        ),
        compiler_params=pltpu.CompilerParams(
            dimension_semantics=("parallel",),   # megacore sharding on v7x
        ),
    )(x_p, w1, b1, w2, b2, w3, b3)

    return out[:B]


def init_params(key):
    """Deterministic init mimicking PyTorch Linear default
    (U[-1/sqrt(fan_in), +1/sqrt(fan_in)]).
    Weights stored as (in_features, out_features); w1 zero-padded on its input
    dim to K_PAD; weights cast to bf16 (biases stay f32)."""
    def linear(k, fan_in, fan_out):
        kw, kb = jax.random.split(k)
        bound = 1.0 / jnp.sqrt(fan_in)
        w = jax.random.uniform(kw, (fan_in, fan_out), jnp.float32, -bound, bound)
        b = jax.random.uniform(kb, (1, fan_out), jnp.float32, -bound, bound)
        return w, b

    k1, k2, k3 = jax.random.split(key, 3)
    w1_f, b1 = linear(k1, K_IN, HIDDEN)
    w2_f, b2 = linear(k2, HIDDEN, HIDDEN)
    w3_f, b3 = linear(k3, HIDDEN, 1)

    w1 = jnp.pad(w1_f, ((0, K_PAD - K_IN), (0, 0))).astype(jnp.bfloat16)
    w2 = w2_f.astype(jnp.bfloat16)
    w3 = w3_f.T.astype(jnp.bfloat16)          # (1, 256) row vector
    b3 = b3.reshape(1, 1)                     # scalar bias, lives in SMEM
    return w1, b1, w2, b2, w3, b3


def reference_forward(x, params):
    """Pure-JAX reference (f32 math on the same stored parameters)."""
    w1, b1, w2, b2, w3, b3 = params
    x_p = jnp.pad(x, ((0, 0), (0, K_PAD - x.shape[1])))
    h1 = jnp.maximum(x_p @ w1.astype(jnp.float32) + b1, 0.0)
    h2 = jnp.maximum(h1 @ w2.astype(jnp.float32) + b2, 0.0)
    z3 = jnp.sum(h2 * w3.astype(jnp.float32), axis=-1, keepdims=True) + b3
    return jnp.tanh(z3)


if __name__ == "__main__":
    key = jax.random.PRNGKey(0)
    kx, kp = jax.random.split(key)

    B = 8  # small batch for the smoke test
    x = jax.random.normal(kx, (B, K_IN), jnp.float32)
    params = init_params(kp)

    out = chessnet_forward(x, params)
    out = jax.block_until_ready(out)

    ref = reference_forward(x, params)
    assert out.shape == (B, 1), out.shape
    # Kernel uses bf16 activations on the MXU path -> allow small tolerance.
    assert jnp.allclose(out, ref, atol=2e-2, rtol=2e-2), \
        float(jnp.max(jnp.abs(out - ref)))

    print("KERNEL_OK")
</pallas_src>

<mosaic_0001>
module attributes {stable_mosaic.version = 11 : i64} {
  func.func @chessnet_kernel(%arg0: i32, %arg1: memref<8x1024xbf16, #tpu.memory_space<vmem>>, %arg2: memref<1024x256xbf16, #tpu.memory_space<vmem>>, %arg3: memref<1x256xf32, #tpu.memory_space<vmem>>, %arg4: memref<256x256xbf16, #tpu.memory_space<vmem>>, %arg5: memref<1x256xf32, #tpu.memory_space<vmem>>, %arg6: memref<1x256xbf16, #tpu.memory_space<vmem>>, %arg7: memref<1x1xf32, #tpu.memory_space<smem>>, %arg8: memref<8x1xf32, #tpu.memory_space<vmem>>) attributes {dimension_semantics = [#tpu.dimension_semantics<parallel>], iteration_bounds = array<i64: 1>, scalar_prefetch = 0 : i64, scratch_operands = 0 : i64, tpu.core_type = #tpu.core_type<tc>, window_params = [{transform_indices = @transform_0, window_bounds = array<i64: 8, 1024>}, {pipeline_mode = #tpu.pipeline_mode<synchronous>, transform_indices = @transform_1, window_bounds = array<i64: 1024, 256>}, {pipeline_mode = #tpu.pipeline_mode<synchronous>, transform_indices = @transform_2, window_bounds = array<i64: 1, 256>}, {pipeline_mode = #tpu.pipeline_mode<synchronous>, transform_indices = @transform_3, window_bounds = array<i64: 256, 256>}, {pipeline_mode = #tpu.pipeline_mode<synchronous>, transform_indices = @transform_4, window_bounds = array<i64: 1, 256>}, {pipeline_mode = #tpu.pipeline_mode<synchronous>, transform_indices = @transform_5, window_bounds = array<i64: 1, 256>}, {transform_indices = @transform_6, window_bounds = array<i64: 1, 1>}, {transform_indices = @transform_7, window_bounds = array<i64: 8, 1>}]} {
    %c0 = arith.constant 0 : index
    %c0_0 = arith.constant 0 : index
    %0 = vector.load %arg1[%c0, %c0_0] : memref<8x1024xbf16, #tpu.memory_space<vmem>>, vector<8x1024xbf16>
    %c0_1 = arith.constant 0 : index
    %c0_2 = arith.constant 0 : index
    %1 = vector.load %arg2[%c0_1, %c0_2] : memref<1024x256xbf16, #tpu.memory_space<vmem>>, vector<1024x256xbf16>
    %cst = arith.constant dense<0.000000e+00> : vector<8x256xf32>
    %2 = tpu.matmul %0, %1, %cst {dimension_numbers = #tpu.dot_dimension_numbers<[1], [0], [0], [1], [0, 0, 1, 1], [], []>} : vector<8x1024xbf16>, vector<1024x256xbf16>, vector<8x256xf32> -> vector<8x256xf32>
    %c0_3 = arith.constant 0 : index
    %c0_4 = arith.constant 0 : index
    %3 = vector.load %arg3[%c0_3, %c0_4] : memref<1x256xf32, #tpu.memory_space<vmem>>, vector<1x256xf32>
    %4 = vector.broadcast %3 : vector<1x256xf32> to vector<8x256xf32>
    %5 = arith.addf %2, %4 : vector<8x256xf32>
    %cst_5 = arith.constant 0.000000e+00 : f32
    %6 = vector.broadcast %cst_5 : f32 to vector<8x256xf32>
    %7 = arith.maximumf %5, %6 : vector<8x256xf32>
    %8 = arith.truncf %7 : vector<8x256xf32> to vector<8x256xbf16>
    %c0_6 = arith.constant 0 : index
    %c0_7 = arith.constant 0 : index
    %9 = vector.load %arg4[%c0_6, %c0_7] : memref<256x256xbf16, #tpu.memory_space<vmem>>, vector<256x256xbf16>
    %cst_8 = arith.constant dense<0.000000e+00> : vector<8x256xf32>
    %10 = tpu.matmul %8, %9, %cst_8 {dimension_numbers = #tpu.dot_dimension_numbers<[1], [0], [0], [1], [0, 0, 1, 1], [], []>} : vector<8x256xbf16>, vector<256x256xbf16>, vector<8x256xf32> -> vector<8x256xf32>
    %c0_9 = arith.constant 0 : index
    %c0_10 = arith.constant 0 : index
    %11 = vector.load %arg5[%c0_9, %c0_10] : memref<1x256xf32, #tpu.memory_space<vmem>>, vector<1x256xf32>
    %12 = vector.broadcast %11 : vector<1x256xf32> to vector<8x256xf32>
    %13 = arith.addf %10, %12 : vector<8x256xf32>
    %cst_11 = arith.constant 0.000000e+00 : f32
    %14 = vector.broadcast %cst_11 : f32 to vector<8x256xf32>
    %15 = arith.maximumf %13, %14 : vector<8x256xf32>
    %c0_12 = arith.constant 0 : index
    %c0_13 = arith.constant 0 : index
    %16 = vector.load %arg6[%c0_12, %c0_13] : memref<1x256xbf16, #tpu.memory_space<vmem>>, vector<1x256xbf16>
    %17 = arith.extf %16 : vector<1x256xbf16> to vector<1x256xf32>
    %18 = vector.broadcast %17 : vector<1x256xf32> to vector<8x256xf32>
    %19 = arith.mulf %15, %18 : vector<8x256xf32>
    %cst_14 = arith.constant dense<0.000000e+00> : vector<8xf32>
    %20 = vector.multi_reduction <add>, %19, %cst_14 [1] : vector<8x256xf32> to vector<8xf32>
    %21 = vector.shape_cast %20 : vector<8xf32> to vector<8x1xf32>
    %c0_15 = arith.constant 0 : index
    %c0_16 = arith.constant 0 : index
    %22 = memref.load %arg7[%c0_15, %c0_16] : memref<1x1xf32, #tpu.memory_space<smem>>
    %23 = vector.broadcast %22 : f32 to vector<8x1xf32>
    %24 = arith.addf %21, %23 : vector<8x1xf32>
    %25 = math.tanh %24 : vector<8x1xf32>
    %c0_17 = arith.constant 0 : index
    %c0_18 = arith.constant 0 : index
    %26 = vector.load %arg8[%c0_17, %c0_18] : memref<8x1xf32, #tpu.memory_space<vmem>>, vector<8x1xf32>
    tpu.vector_store %arg8[%c0_17, %c0_18], %25 {strides = array<i32>} : memref<8x1xf32, #tpu.memory_space<vmem>>, vector<8x1xf32>,
    return
  }
  func.func @transform_0(%arg0: i32) -> (i32, i32) {
    %c0_i32 = arith.constant 0 : i32
    %c0_i32_0 = arith.constant 0 : i32
    return %arg0, %c0_i32 : i32, i32
  }
  func.func @transform_1(%arg0: i32) -> (i32, i32) {
    %c0_i32 = arith.constant 0 : i32
    %c0_i32_0 = arith.constant 0 : i32
    %c0_i32_1 = arith.constant 0 : i32
    return %c0_i32, %c0_i32_0 : i32, i32
  }
  func.func @transform_2(%arg0: i32) -> (i32, i32) {
    %c0_i32 = arith.constant 0 : i32
    %c0_i32_0 = arith.constant 0 : i32
    %c0_i32_1 = arith.constant 0 : i32
    return %c0_i32, %c0_i32_0 : i32, i32
  }
  func.func @transform_3(%arg0: i32) -> (i32, i32) {
    %c0_i32 = arith.constant 0 : i32
    %c0_i32_0 = arith.constant 0 : i32
    %c0_i32_1 = arith.constant 0 : i32
    return %c0_i32, %c0_i32_0 : i32, i32
  }
  func.func @transform_4(%arg0: i32) -> (i32, i32) {
    %c0_i32 = arith.constant 0 : i32
    %c0_i32_0 = arith.constant 0 : i32
    %c0_i32_1 = arith.constant 0 : i32
    return %c0_i32, %c0_i32_0 : i32, i32
  }
  func.func @transform_5(%arg0: i32) -> (i32, i32) {
    %c0_i32 = arith.constant 0 : i32
    %c0_i32_0 = arith.constant 0 : i32
    %c0_i32_1 = arith.constant 0 : i32
    return %c0_i32, %c0_i32_0 : i32, i32
  }
  func.func @transform_6(%arg0: i32) -> (i32, i32) {
    %c0_i32 = arith.constant 0 : i32
    %c0_i32_0 = arith.constant 0 : i32
    %c0_i32_1 = arith.constant 0 : i32
    return %c0_i32, %c0_i32_0 : i32, i32
  }
  func.func @transform_7(%arg0: i32) -> (i32, i32) {
    %c0_i32 = arith.constant 0 : i32
    %c0_i32_0 = arith.constant 0 : i32
    return %arg0, %c0_i32 : i32, i32
  }
}

</mosaic_0001>

<bundles_post_ra>
// kernel: tpu_custom_call.1
= control target key start
LH: loop header
LB: loop body
LE: loop exit
PB: predicated region body
PF: predicated region fallthrough
CT: control target
= control target key end

     0   :  { %13 = vsyncpa [#allocation4], 0  ;;  %s1956_s0 = inlined_call_operand.hbm [shape: bf16[8,1024], index: 0, kind: input, shape index: {}]   ;;  %s1957_s1 = inlined_call_operand.hbm [shape: bf16[1024,256], index: 1, kind: input, shape index: {}]   ;;  %s1958_s2 = inlined_call_operand.vmem [shape: f32[1,256], index: 2, kind: input, shape index: {}]   ;;  %s1959_s3 = inlined_call_operand.hbm [shape: bf16[256,256], index: 3, kind: input, shape index: {}]   ;;  %s1960_s4 = inlined_call_operand.vmem [shape: f32[1,256], index: 4, kind: input, shape index: {}]   ;;  %s1961_s5 = inlined_call_operand.vmem [shape: bf16[1,256], index: 5, kind: input, shape index: {}]   ;;  %s1962_s6 = inlined_call_operand.<no memory space> [shape: f32[1,1], index: 6, kind: input, shape index: {}]   ;;  %s1963_s7 = inlined_call_operand.vmem [shape: f32[8,1], index: 7, kind: output, shape index: {}]  }
   0x1   :  { %14 = vsyncpa [#allocation6], 0  ;;  %s1836_s24 = smov [#allocation5]   ;;  %s1766_s28 = scalar_lea.hbm %s1957_s1, 16384 }
   0x2   :  { %s30_s25 = sshll.u32 %s1836_s24, 4  ;;  %p1767_p0 = scmp.ne.s32.totalorder %s1957_s1, %s1766_s28  ;;  %s31_s25 = int_to_ptr.vmem [resolvable:$true] %s30_s25 }
   0x3   :  { %p1770_p1 = scmp.lt.u32.totalorder %s1766_s28, %s1957_s1 }
   0x5   :  { %p1772_p2 = pnand %p1770_p1, %p1767_p0 }
   0x7   :  { %1775 = shalt.err (!%p1772_p2)
}
   0x8   :  { %s1776_s10 = scalar_lea.vmem %s31_s25, 16384  ;;  %p1781_p4 = scmp.lt.s32.totalorder %s31_s25, %s31_s25 }
   0x9   :  { %p1777_p3 = scmp.ne.s32.totalorder %s31_s25, %s1776_s10  ;;  %p1782_p5 = scmp.lt.s32.totalorder %s1776_s10, %s1776_s10 }
   0xb   :  { %p1783_p6 = por %p1782_p5, %p1781_p4 }
   0xd   :  { %p1784_p7 = pnand %p1783_p6, %p1777_p3 }
   0xf   :  { %1787 = shalt.err (!%p1784_p7)
}
  0x10   :  { %s1837_s11 = smov 128   ;;  %s1838_s12 = smov 8  }
  0x11   :  { %36 = dma.hbm_to_vmem [thread:$0]  %s1957_s1, 16384, %s31_s25, [#allocation6], %s1837_s11, %s1837_s11, %s1838_s12  }
  0x12   :  { %s1839_s15 = smov [#allocation3]   ;;  %s1840_s17 = smov [#allocation7]  }
  0x13   :  { %s21_s16 = sshll.u32 %s1839_s15, 4  ;;  %s44_s18 = sshll.u32 %s1840_s17, 4  ;;  %s22_s16 = int_to_ptr.vmem [resolvable:$true] %s21_s16  ;;  %s45_s18 = int_to_ptr.vmem [resolvable:$true] %s44_s18 }
  0x14   :  { %s1788_s21 = scalar_lea.hbm %s1956_s0, 512 }
  0x15   :  { %p1789_p8 = scmp.ne.s32.totalorder %s1956_s0, %s1788_s21  ;;  %p1792_p9 = scmp.lt.u32.totalorder %s1788_s21, %s1956_s0 }
  0x17   :  { %p1794_p10 = pnand %p1792_p9, %p1789_p8 }
  0x19   :  { %1797 = shalt.err (!%p1794_p10)
}
  0x1a   :  { %s1798_s1 = scalar_lea.vmem %s22_s16, 512  ;;  %p1803_p12 = scmp.lt.s32.totalorder %s22_s16, %s22_s16 }
  0x1b   :  { %p1799_p11 = scmp.ne.s32.totalorder %s22_s16, %s1798_s1  ;;  %p1804_p13 = scmp.lt.s32.totalorder %s1798_s1, %s1798_s1 }
  0x1d   :  { %p1805_p0 = por %p1804_p13, %p1803_p12 }
  0x1f   :  { %p1806_p1 = pnand %p1805_p0, %p1799_p11 }
  0x21   :  { %1809 = shalt.err (!%p1806_p1)
}
  0x22   :  { %24 = dma.hbm_to_vmem [thread:$0]  %s1956_s0, 512, %s22_s16, [#allocation4]  }
  0x23   :  { %s1810_s30 = scalar_lea.hbm %s1959_s3, 4096 }
  0x24   :  { %p1811_p2 = scmp.ne.s32.totalorder %s1959_s3, %s1810_s30  ;;  %p1814_p3 = scmp.lt.u32.totalorder %s1810_s30, %s1959_s3 }
  0x26   :  { %p1816_p4 = pnand %p1814_p3, %p1811_p2 }
  0x28   :  { %1819 = shalt.err (!%p1816_p4)
}
  0x29   :  { %s1820_s14 = scalar_lea.vmem %s45_s18, 4096  ;;  %p1825_p6 = scmp.lt.s32.totalorder %s45_s18, %s45_s18 }
  0x2a   :  { %p1821_p5 = scmp.ne.s32.totalorder %s45_s18, %s1820_s14  ;;  %p1826_p7 = scmp.lt.s32.totalorder %s1820_s14, %s1820_s14 }
  0x2c   :  { %p1827_p8 = por %p1826_p7, %p1825_p6 }
  0x2e   :  { %p1828_p9 = pnand %p1827_p8, %p1821_p5 }
  0x30   :  { %1831 = shalt.err (!%p1828_p9)
}
  0x31   :  { %50 = dma.hbm_to_vmem [thread:$0]  %s1959_s3, 4096, %s45_s18, [#allocation6], %s1837_s11, %s1837_s11, %s1838_s12  }
  0x32   :  { %1832 = dma.done.wait [#allocation4], 512  }
  0x33   :  { %1833 = vsyncadd [#allocation4], 4294966784 }
  0x34   :  { %1834 = dma.done.wait [#allocation6], 20480  }
  0x35   :  { %1835 = vsyncadd [#allocation6], 4294946816  ;;  %v1516_v0 = vld [vmem:[#allocation5 + $0x104] ss:$8 sps:$4 sm:$0xff]   ;;  %v1518_v1 = vld [vmem:[#allocation5 + $0x100] ss:$8 sps:$4 sm:$0xff]  }
  0x36   :  { %919 = vmatprep.subr.bf16.mxu0 %v1516_v0  ;;  %v1519_v2 = vld [vmem:[#allocation5 + $0x114] ss:$8 sps:$4 sm:$0xff]   ;;  %v1521_v3 = vld [vmem:[#allocation5 + $0x110] ss:$8 sps:$4 sm:$0xff]   ;;  %v1522_v4 = vld [vmem:[#allocation5 + $0x124] ss:$8 sps:$4 sm:$0xff]  }
  0x37   :  { %920 = vmatpush1.bf16.msra.mxu0 %v1518_v1  ;;  %v1524_v5 = vld [vmem:[#allocation5 + $0x120] ss:$8 sps:$4 sm:$0xff]   ;;  %v1525_v6 = vld [vmem:[#allocation5 + $0x134] ss:$8 sps:$4 sm:$0xff]   ;;  %v1527_v7 = vld [vmem:[#allocation5 + $0x130] ss:$8 sps:$4 sm:$0xff]  }
  0x38   :  { %921 = vmatprep.subr.bf16.mxu0 %v1519_v2  ;;  %v1528_v8 = vld [vmem:[#allocation5 + $0x144] ss:$8 sps:$4 sm:$0xff]   ;;  %v1530_v9 = vld [vmem:[#allocation5 + $0x140] ss:$8 sps:$4 sm:$0xff]   ;;  %v1531_v10 = vld [vmem:[#allocation5 + $0x154] ss:$8 sps:$4 sm:$0xff]  }
  0x39   :  { %v1533_v11 = vld [vmem:[#allocation5 + $0x150] ss:$8 sps:$4 sm:$0xff]   ;;  %v1534_v12 = vld [vmem:[#allocation5 + $0x164] ss:$8 sps:$4 sm:$0xff]   ;;  %v1536_v15 = vld [vmem:[#allocation5 + $0x160] ss:$8 sps:$4 sm:$0xff]  }
  0x3a   :  { %v1923_v13 = vld [vmem:[#allocation3 + $0x8] sm:$0xff]  ;;  %v1537_v16 = vld [vmem:[#allocation5 + $0x174] ss:$8 sps:$4 sm:$0xff]   ;;  %v1539_v17 = vld [vmem:[#allocation5 + $0x170] ss:$8 sps:$4 sm:$0xff]   ;;  %vm1323_vm0 = vcmask 7168  }
  0x3b   :  { %922 = vmatpush1.bf16.msra.mxu0 %v1521_v3  ;;  %v1334_v14 = vcombine.high %v1923_v13, %v1923_v13  ;;  %v1540_v18 = vld [vmem:[#allocation5 + $0x184] ss:$8 sps:$4 sm:$0xff]   ;;  %v1542_v19 = vld [vmem:[#allocation5 + $0x180] ss:$8 sps:$4 sm:$0xff]   ;;  %v1543_v20 = vld [vmem:[#allocation5 + $0x194] ss:$8 sps:$4 sm:$0xff]   ;;  %v1333_v48 = vcombine.low %v1923_v13, %v1923_v13 }
  0x3c   :  { %923 = vmatprep.subr.bf16.mxu0 %v1522_v4  ;;  %v1545_v21 = vld [vmem:[#allocation5 + $0x190] ss:$8 sps:$4 sm:$0xff]   ;;  %v1546_v22 = vld [vmem:[#allocation5 + $0x1a4] ss:$8 sps:$4 sm:$0xff]   ;;  %v1548_v23 = vld [vmem:[#allocation5 + $0x1a0] ss:$8 sps:$4 sm:$0xff]  }
  0x3d   :  { %951 = vmatprep.mubr.bf16.mxu0 %v1334_v14  ;;  %v1549_v24 = vld [vmem:[#allocation5 + $0x1b4] ss:$8 sps:$4 sm:$0xff]   ;;  %v1611_v25 = vld [vmem:[#allocation5 + $0x4] ss:$8 sps:$4 sm:$0xff]   ;;  %v1613_v26 = vld [vmem:[#allocation5] ss:$8 sps:$4 sm:$0xff]  }
  0x3e   :  { %v1551_v27 = vld [vmem:[#allocation5 + $0x1b0] ss:$8 sps:$4 sm:$0xff]   ;;  %v1552_v28 = vld [vmem:[#allocation5 + $0x1c4] ss:$8 sps:$4 sm:$0xff]   ;;  %878 = vmatprep.subr.bf16.mxu1 %v1611_v25  ;;  %v1617_v29 = vld [vmem:[#allocation5 + $0x14] ss:$8 sps:$4 sm:$0xff]  }
  0x3f   :  { %924 = vmatpush1.bf16.msra.mxu0 %v1524_v5  ;;  %879 = vmatpush1.bf16.msra.mxu1 %v1613_v26  ;;  %v1619_v30 = vld [vmem:[#allocation5 + $0x10] ss:$8 sps:$4 sm:$0xff]   ;;  %v1554_v31 = vld [vmem:[#allocation5 + $0x1c0] ss:$8 sps:$4 sm:$0xff]   ;;  %v1555_v32 = vld [vmem:[#allocation5 + $0x1d4] ss:$8 sps:$4 sm:$0xff]  }
  0x40   :  { %925 = vmatprep.subr.bf16.mxu0 %v1525_v6  ;;  %880 = vmatprep.subr.bf16.mxu1 %v1617_v29  ;;  %v1625_v33 = vld [vmem:[#allocation5 + $0x24] ss:$8 sps:$4 sm:$0xff]   ;;  %v1627_v34 = vld [vmem:[#allocation5 + $0x20] ss:$8 sps:$4 sm:$0xff]   ;;  %v1631_v35 = vld [vmem:[#allocation5 + $0x34] ss:$8 sps:$4 sm:$0xff]  }
  0x41   :  { %v1557_v36 = vld [vmem:[#allocation5 + $0x1d0] ss:$8 sps:$4 sm:$0xff]   ;;  %v1558_v37 = vld [vmem:[#allocation5 + $0x1e4] ss:$8 sps:$4 sm:$0xff]   ;;  %v1560_v40 = vld [vmem:[#allocation5 + $0x1e0] ss:$8 sps:$4 sm:$0xff]  }
  0x42   :  { %v1633_v38 = vld [vmem:[#allocation5 + $0x30] ss:$8 sps:$4 sm:$0xff]   ;;  %v1637_v39 = vld [vmem:[#allocation5 + $0x44] ss:$8 sps:$4 sm:$0xff]   ;;  %v1561_v41 = vld [vmem:[#allocation5 + $0x1f4] ss:$8 sps:$4 sm:$0xff]  }
  0x43   :  { %926 = vmatpush1.bf16.msra.mxu0 %v1527_v7  ;;  %881 = vmatpush1.bf16.msra.mxu1 %v1619_v30  ;;  %v1639_v42 = vld [vmem:[#allocation5 + $0x40] ss:$8 sps:$4 sm:$0xff]   ;;  %v1643_v43 = vld [vmem:[#allocation5 + $0x54] ss:$8 sps:$4 sm:$0xff]   ;;  %v1563_v44 = vld [vmem:[#allocation5 + $0x1f0] ss:$8 sps:$4 sm:$0xff]  }
  0x44   :  { %927 = vmatprep.subr.bf16.mxu0 %v1528_v8  ;;  %882 = vmatprep.subr.bf16.mxu1 %v1625_v33  ;;  %v1568_v45 = vld [vmem:[#allocation5 + $0x204] ss:$8 sps:$4 sm:$0xff]   ;;  %v1927_v46 = vld [vmem:[#allocation3 + $0x10] sm:$0xff]  ;;  %v1566_v50 = vld [vmem:[#allocation5 + $0x200] ss:$8 sps:$4 sm:$0xff]  }
  0x45   :  { %v1645_v47 = vld [vmem:[#allocation5 + $0x50] ss:$8 sps:$4 sm:$0xff]   ;;  %v1649_v49 = vld [vmem:[#allocation5 + $0x64] ss:$8 sps:$4 sm:$0xff]   ;;  %v1336_v51 = vcombine.high %v1927_v46, %v1927_v46  ;;  %v1571_v52 = vld [vmem:[#allocation5 + $0x214] ss:$8 sps:$4 sm:$0xff]  }
  0x46   :  { %v1651_v53 = vld [vmem:[#allocation5 + $0x60] ss:$8 sps:$4 sm:$0xff]   ;;  %v1655_v54 = vld [vmem:[#allocation5 + $0x74] ss:$8 sps:$4 sm:$0xff]   ;;  %v1569_v55 = vld [vmem:[#allocation5 + $0x210] ss:$8 sps:$4 sm:$0xff]  }
  0x47   :  { %928 = vmatpush1.bf16.msra.mxu0 %v1530_v9  ;;  %883 = vmatpush1.bf16.msra.mxu1 %v1627_v34  ;;  %v1574_v56 = vld [vmem:[#allocation5 + $0x224] ss:$8 sps:$4 sm:$0xff]   ;;  %v1657_v57 = vld [vmem:[#allocation5 + $0x70] ss:$8 sps:$4 sm:$0xff]   ;;  %v1572_v59 = vld [vmem:[#allocation5 + $0x220] ss:$8 sps:$4 sm:$0xff]  }
  0x48   :  { %929 = vmatprep.subr.bf16.mxu0 %v1531_v10  ;;  %884 = vmatprep.subr.bf16.mxu1 %v1631_v35  ;;  %v1661_v58 = vld [vmem:[#allocation5 + $0x84] ss:$8 sps:$4 sm:$0xff]   ;;  %v1577_v60 = vld [vmem:[#allocation5 + $0x234] ss:$8 sps:$4 sm:$0xff]   ;;  %v1663_v61 = vld [vmem:[#allocation5 + $0x80] ss:$8 sps:$4 sm:$0xff]  }
  0x49   :  { %v1667_v62 = vld [vmem:[#allocation5 + $0x94] ss:$8 sps:$4 sm:$0xff]   ;;  %v1575_v63 = vld [vmem:[#allocation5 + $0x230] ss:$8 sps:$4 sm:$0xff]   ;;  %v1580_v0 = vld [vmem:[#allocation5 + $0x244] ss:$8 sps:$4 sm:$0xff]  }
  0x4a   :  { %v1669_v1 = vld [vmem:[#allocation5 + $0x90] ss:$8 sps:$4 sm:$0xff]   ;;  %v1673_v2 = vld [vmem:[#allocation5 + $0xa4] ss:$8 sps:$4 sm:$0xff]   ;;  %v1578_v3 = vld [vmem:[#allocation5 + $0x240] ss:$8 sps:$4 sm:$0xff]  }
  0x4b   :  { %930 = vmatpush1.bf16.msra.mxu0 %v1533_v11  ;;  %885 = vmatpush1.bf16.msra.mxu1 %v1633_v38  ;;  %v1583_v4 = vld [vmem:[#allocation5 + $0x254] ss:$8 sps:$4 sm:$0xff]   ;;  %v1675_v5 = vld [vmem:[#allocation5 + $0xa0] ss:$8 sps:$4 sm:$0xff]   ;;  %v1581_v7 = vld [vmem:[#allocation5 + $0x250] ss:$8 sps:$4 sm:$0xff]  }
  0x4c   :  { %931 = vmatprep.subr.bf16.mxu0 %v1534_v12  ;;  %886 = vmatprep.subr.bf16.mxu1 %v1637_v39  ;;  %v1679_v6 = vld [vmem:[#allocation5 + $0xb4] ss:$8 sps:$4 sm:$0xff]   ;;  %v1586_v8 = vld [vmem:[#allocation5 + $0x264] ss:$8 sps:$4 sm:$0xff]   ;;  %v1681_v10 = vld [vmem:[#allocation5 + $0xb0] ss:$8 sps:$4 sm:$0xff]  }
  0x4d   :  { %v66_v9 = vld [vmem:[#allocation3] sm:$0xff]  ;;  %v1589_v14 = vld [vmem:[#allocation5 + $0x274] ss:$8 sps:$4 sm:$0xff]   ;;  %v1593_v25 = vld [vmem:[#allocation5 + $0x290] ss:$8 sps:$4 sm:$0xff]  }
  0x4e   :  { %v1332_v11 = vcombine.high %v66_v9, %v66_v9  ;;  %v1685_v12 = vld [vmem:[#allocation5 + $0xc4] ss:$8 sps:$4 sm:$0xff]   ;;  %v1584_v13 = vld [vmem:[#allocation5 + $0x260] ss:$8 sps:$4 sm:$0xff]   ;;  %v1601_v30 = vld [vmem:[#allocation5 + $0x2b4] ss:$8 sps:$4 sm:$0xff]  }
  0x4f   :  { %932 = vmatpush1.bf16.msra.mxu0 %v1536_v15  ;;  %887 = vmatpush1.bf16.msra.mxu1 %v1639_v42  ;;  %v1687_v15 = vld [vmem:[#allocation5 + $0xc0] ss:$8 sps:$4 sm:$0xff]   ;;  %v1598_v26 = vld [vmem:[#allocation5 + $0x2a4] ss:$8 sps:$4 sm:$0xff]   ;;  %v1721_v33 = vld [vmem:[#allocation7 + $0x14] ss:$8 sps:$4 sm:$0xff]  }
  0x50   :  { %933 = vmatprep.subr.bf16.mxu0 %v1537_v16  ;;  %888 = vmatprep.subr.bf16.mxu1 %v1643_v43  ;;  %v1691_v16 = vld [vmem:[#allocation5 + $0xd4] ss:$8 sps:$4 sm:$0xff]   ;;  %v1596_v29 = vld [vmem:[#allocation5 + $0x2a0] ss:$8 sps:$4 sm:$0xff]   ;;  %v1599_v34 = vld [vmem:[#allocation5 + $0x2b0] ss:$8 sps:$4 sm:$0xff]  }
  0x51   :  { %910 = vmatprep.mubr.bf16.mxu1 %v1332_v11  ;;  %v1604_v35 = vld [vmem:[#allocation5 + $0x2c4] ss:$8 sps:$4 sm:$0xff]   ;;  %v1602_v38 = vld [vmem:[#allocation5 + $0x2c0] ss:$8 sps:$4 sm:$0xff]   ;;  %v1607_v39 = vld [vmem:[#allocation5 + $0x2d4] ss:$8 sps:$4 sm:$0xff]  }
  0x52   :  { %v1605_v42 = vld [vmem:[#allocation5 + $0x2d0] ss:$8 sps:$4 sm:$0xff]   ;;  %v1610_v43 = vld [vmem:[#allocation5 + $0x2e4] ss:$8 sps:$4 sm:$0xff]   ;;  %v1746_v11 = vld [vmem:[#allocation7 + $0xa0] ss:$8 sps:$4 sm:$0xff]  }
  0x53   :  { %934 = vmatpush1.bf16.msra.mxu0 %v1539_v17  ;;  %889 = vmatpush1.bf16.msra.mxu1 %v1645_v47  ;;  %v1587_v17 = vld [vmem:[#allocation5 + $0x270] ss:$8 sps:$4 sm:$0xff]   ;;  %v1608_v47 = vld [vmem:[#allocation5 + $0x2e0] ss:$8 sps:$4 sm:$0xff]  }
  0x54   :  { %935 = vmatprep.subr.bf16.mxu0 %v1540_v18  ;;  %890 = vmatprep.subr.bf16.mxu1 %v1649_v49  ;;  %v1592_v18 = vld [vmem:[#allocation5 + $0x284] ss:$8 sps:$4 sm:$0xff]   ;;  %v1728_v49 = vld [vmem:[#allocation7 + $0x40] ss:$8 sps:$4 sm:$0xff]  }
  0x57   :  { %936 = vmatpush1.bf16.msra.mxu0 %v1542_v19  ;;  %891 = vmatpush1.bf16.msra.mxu1 %v1651_v53  ;;  %v1693_v19 = vld [vmem:[#allocation5 + $0xd0] ss:$8 sps:$4 sm:$0xff]  }
  0x58   :  { %937 = vmatprep.subr.bf16.mxu0 %v1543_v20  ;;  %892 = vmatprep.subr.bf16.mxu1 %v1655_v54  ;;  %v1697_v20 = vld [vmem:[#allocation5 + $0xe4] ss:$8 sps:$4 sm:$0xff]   ;;  %v1933_v53 = vld [vmem:[#allocation3 + $0x18] sm:$0xff] }
  0x59   :  { %v1731_v54 = vld [vmem:[#allocation7 + $0x50] ss:$8 sps:$4 sm:$0xff]  }
  0x5b   :  { %938 = vmatpush1.bf16.msra.mxu0 %v1545_v21  ;;  %893 = vmatpush1.bf16.msra.mxu1 %v1657_v57  ;;  %v1590_v21 = vld [vmem:[#allocation5 + $0x280] ss:$8 sps:$4 sm:$0xff]  }
  0x5c   :  { %939 = vmatprep.subr.bf16.mxu0 %v1546_v22  ;;  %894 = vmatprep.subr.bf16.mxu1 %v1661_v58  ;;  %v1595_v22 = vld [vmem:[#allocation5 + $0x294] ss:$8 sps:$4 sm:$0xff]   ;;  %v1622_v57 = vld [vmem:[#allocation5 + $0x300] ss:$8 sps:$4 sm:$0xff]   ;;  %v1338_v58 = vcombine.high %v1933_v53, %v1933_v53 }
  0x5f   :  { %940 = vmatpush1.bf16.msra.mxu0 %v1548_v23  ;;  %895 = vmatpush1.bf16.msra.mxu1 %v1663_v61  ;;  %v1699_v23 = vld [vmem:[#allocation5 + $0xe0] ss:$8 sps:$4 sm:$0xff]   ;;  %v1739_v61 = vld [vmem:[#allocation7 + $0x74] ss:$8 sps:$4 sm:$0xff]  }
  0x60   :  { %941 = vmatprep.subr.bf16.mxu0 %v1549_v24  ;;  %896 = vmatprep.subr.bf16.mxu1 %v1667_v62  ;;  %v1703_v24 = vld [vmem:[#allocation5 + $0xf4] ss:$8 sps:$4 sm:$0xff]   ;;  %v1628_v62 = vld [vmem:[#allocation5 + $0x310] ss:$8 sps:$4 sm:$0xff]  }
  0x63   :  { %942 = vmatpush1.bf16.msra.mxu0 %v1551_v27  ;;  %897 = vmatpush1.bf16.msra.mxu1 %v1669_v1  ;;  %v1705_v27 = vld [vmem:[#allocation5 + $0xf0] ss:$8 sps:$4 sm:$0xff]   ;;  %v1634_v1 = vld [vmem:[#allocation5 + $0x320] ss:$8 sps:$4 sm:$0xff]  }
  0x64   :  { %943 = vmatprep.subr.bf16.mxu0 %v1552_v28  ;;  %898 = vmatprep.subr.bf16.mxu1 %v1673_v2  ;;  %v1718_v28 = vld [vmem:[#allocation7 + $0x4] ss:$8 sps:$4 sm:$0xff]   ;;  %v1642_v2 = vld [vmem:[#allocation5 + $0x334] ss:$8 sps:$4 sm:$0xff]  }
  0x67   :  { %944 = vmatpush1.bf16.msra.mxu0 %v1554_v31  ;;  %899 = vmatpush1.bf16.msra.mxu1 %v1675_v5  ;;  %v1331_v31 = vcombine.low %v66_v9, %v66_v9  ;;  %v1640_v5 = vld [vmem:[#allocation5 + $0x330] ss:$8 sps:$4 sm:$0xff]   ;;  %v1646_v9 = vld [vmem:[#allocation5 + $0x340] ss:$8 sps:$4 sm:$0xff]  }
  0x68   :  { %945 = vmatprep.subr.bf16.mxu0 %v1555_v32  ;;  %900 = vmatprep.subr.bf16.mxu1 %v1679_v6  ;;  %v1716_v32 = vld [vmem:[#allocation7] ss:$8 sps:$4 sm:$0xff]   ;;  %v1648_v6 = vld [vmem:[#allocation5 + $0x344] ss:$8 sps:$4 sm:$0xff]  }
  0x6b   :  { %946 = vmatpush1.bf16.msra.mxu0 %v1557_v36  ;;  %901 = vmatpush1.bf16.msra.mxu1 %v1681_v10  ;;  %v1719_v36 = vld [vmem:[#allocation7 + $0x10] ss:$8 sps:$4 sm:$0xff]   ;;  %v1654_v10 = vld [vmem:[#allocation5 + $0x354] ss:$8 sps:$4 sm:$0xff]  }
  0x6c   :  { %947 = vmatprep.subr.bf16.mxu0 %v1558_v37  ;;  %902 = vmatprep.subr.bf16.mxu1 %v1685_v12  ;;  %v1724_v37 = vld [vmem:[#allocation7 + $0x24] ss:$8 sps:$4 sm:$0xff]   ;;  %v1751_v12 = vld [vmem:[#allocation7 + $0xb4] ss:$8 sps:$4 sm:$0xff]  }
  0x6f   :  { %948 = vmatpush1.bf16.msra.mxu0 %v1560_v40  ;;  %903 = vmatpush1.bf16.msra.mxu1 %v1687_v15  ;;  %v1722_v40 = vld [vmem:[#allocation7 + $0x20] ss:$8 sps:$4 sm:$0xff]   ;;  %v1749_v15 = vld [vmem:[#allocation7 + $0xb0] ss:$8 sps:$4 sm:$0xff]  }
  0x70   :  { %949 = vmatprep.subr.bf16.mxu0 %v1561_v41  ;;  %904 = vmatprep.subr.bf16.mxu1 %v1691_v16  ;;  %v1727_v41 = vld [vmem:[#allocation7 + $0x34] ss:$8 sps:$4 sm:$0xff]   ;;  %v1754_v16 = vld [vmem:[#allocation7 + $0xc4] ss:$8 sps:$4 sm:$0xff]  }
  0x73   :  { %950 = vmatpush1.bf16.msra.mxu0 %v1563_v44  ;;  %905 = vmatpush1.bf16.msra.mxu1 %v1693_v19  ;;  %v1725_v44 = vld [vmem:[#allocation7 + $0x30] ss:$8 sps:$4 sm:$0xff]   ;;  %v1752_v19 = vld [vmem:[#allocation7 + $0xc0] ss:$8 sps:$4 sm:$0xff]  }
  0x74   :  { %960 = vmatprep.subr.bf16.mxu0 %v1568_v45  ;;  %906 = vmatprep.subr.bf16.mxu1 %v1697_v20  ;;  %v1730_v45 = vld [vmem:[#allocation7 + $0x44] ss:$8 sps:$4 sm:$0xff]   ;;  %v1664_v20 = vld [vmem:[#allocation5 + $0x370] ss:$8 sps:$4 sm:$0xff]  }
  0x76   :  { %952 = vmatmul.mubr.bf16.vlgmr.msra.gmra.mrb[0].mxu0 %v1333_v48  ;;  %v1616_v48 = vld [vmem:[#allocation5 + $0x2f4] ss:$8 sps:$4 sm:$0xff]  }
  0x77   :  { %961 = vmatpush1.bf16.msra.mxu0 %v1566_v50  ;;  %992 = vmatprep.mubr.bf16.mxu0 %v1336_v51  ;;  %v1733_v50 = vld [vmem:[#allocation7 + $0x54] ss:$8 sps:$4 sm:$0xff]   ;;  %v1614_v51 = vld [vmem:[#allocation5 + $0x2f0] ss:$8 sps:$4 sm:$0xff]  }
  0x78   :  { %962 = vmatprep.subr.bf16.mxu0 %v1571_v52  ;;  %907 = vmatpush1.bf16.msra.mxu1 %v1699_v23  ;;  %v1624_v52 = vld [vmem:[#allocation5 + $0x304] ss:$8 sps:$4 sm:$0xff]   ;;  %v1678_v23 = vld [vmem:[#allocation5 + $0x394] ss:$8 sps:$4 sm:$0xff]  }
  0x79   :  { %908 = vmatprep.subr.bf16.mxu1 %v1703_v24  ;;  %v1676_v24 = vld [vmem:[#allocation5 + $0x390] ss:$8 sps:$4 sm:$0xff]  }
  0x7b   :  { %963 = vmatpush1.bf16.msra.mxu0 %v1569_v55  ;;  %v1335_v55 = vcombine.low %v1927_v46, %v1927_v46  ;;  %v1737_v46 = vld [vmem:[#allocation7 + $0x70] ss:$8 sps:$4 sm:$0xff]  }
  0x7c   :  { %964 = vmatprep.subr.bf16.mxu0 %v1574_v56  ;;  %909 = vmatpush1.bf16.msra.mxu1 %v1705_v27  ;;  %v1736_v56 = vld [vmem:[#allocation7 + $0x64] ss:$8 sps:$4 sm:$0xff]   ;;  %v1690_v27 = vld [vmem:[#allocation5 + $0x3b4] ss:$8 sps:$4 sm:$0xff]  }
  0x7d   :  { %1250 = vmatprep.subr.bf16.mxu1 %v1718_v28  ;;  %v1688_v28 = vld [vmem:[#allocation5 + $0x3b0] ss:$8 sps:$4 sm:$0xff]  }
  0x7f   :  { %965 = vmatpush1.bf16.msra.mxu0 %v1572_v59  ;;  %911 = vmatmul.mubr.bf16.vlgmr.msra.gmra.mrb[0].mxu1 %v1331_v31  ;;  %v1630_v59 = vld [vmem:[#allocation5 + $0x314] ss:$8 sps:$4 sm:$0xff]  }
  0x80   :  { %966 = vmatprep.subr.bf16.mxu0 %v1577_v60  ;;  %1251 = vmatpush1.bf16.msra.mxu1 %v1716_v32  ;;  %v1734_v60 = vld [vmem:[#allocation7 + $0x60] ss:$8 sps:$4 sm:$0xff]   ;;  %v1702_v31 = vld [vmem:[#allocation5 + $0x3d4] ss:$8 sps:$4 sm:$0xff]   ;;  %v1700_v32 = vld [vmem:[#allocation5 + $0x3d0] ss:$8 sps:$4 sm:$0xff]  }
  0x81   :  { %1252 = vmatprep.subr.bf16.mxu1 %v1721_v33  ;;  %v1708_v33 = vld [vmem:[#allocation5 + $0x3e4] ss:$8 sps:$4 sm:$0xff]  }
  0x83   :  { %967 = vmatpush1.bf16.msra.mxu0 %v1575_v63  ;;  %v1636_v63 = vld [vmem:[#allocation5 + $0x324] ss:$8 sps:$4 sm:$0xff]  }
  0x84   :  { %968 = vmatprep.subr.bf16.mxu0 %v1580_v0  ;;  %1253 = vmatpush1.bf16.msra.mxu1 %v1719_v36  ;;  %v1742_v0 = vld [vmem:[#allocation7 + $0x84] ss:$8 sps:$4 sm:$0xff]   ;;  %v1711_v36 = vld [vmem:[#allocation5 + $0x3f0] ss:$8 sps:$4 sm:$0xff]  }
  0x85   :  { %1254 = vmatprep.subr.bf16.mxu1 %v1724_v37  ;;  %v1337_v37 = vcombine.low %v1933_v53, %v1933_v53 }
  0x87   :  { %969 = vmatpush1.bf16.msra.mxu0 %v1578_v3  ;;  %v1740_v3 = vld [vmem:[#allocation7 + $0x80] ss:$8 sps:$4 sm:$0xff]  }
  0x88   :  { %970 = vmatprep.subr.bf16.mxu0 %v1583_v4  ;;  %1255 = vmatpush1.bf16.msra.mxu1 %v1722_v40  ;;  %v1745_v4 = vld [vmem:[#allocation7 + $0x94] ss:$8 sps:$4 sm:$0xff]   ;;  %v1760_v40 = vld [vmem:[#allocation7 + $0xe4] ss:$8 sps:$4 sm:$0xff]  }
  0x89   :  { %1256 = vmatprep.subr.bf16.mxu1 %v1727_v41  ;;  %v1758_v41 = vld [vmem:[#allocation7 + $0xe0] ss:$8 sps:$4 sm:$0xff]  }
  0x8b   :  { %971 = vmatpush1.bf16.msra.mxu0 %v1581_v7  ;;  %v1743_v7 = vld [vmem:[#allocation7 + $0x90] ss:$8 sps:$4 sm:$0xff]  }
  0x8c   :  { %972 = vmatprep.subr.bf16.mxu0 %v1586_v8  ;;  %1257 = vmatpush1.bf16.msra.mxu1 %v1725_v44  ;;  %v1748_v8 = vld [vmem:[#allocation7 + $0xa4] ss:$8 sps:$4 sm:$0xff]  }
  0x8d   :  { %1258 = vmatprep.subr.bf16.mxu1 %v1730_v45 }
  0x8f   :  { %973 = vmatpush1.bf16.msra.mxu0 %v1584_v13  ;;  %v1652_v13 = vld [vmem:[#allocation5 + $0x350] ss:$8 sps:$4 sm:$0xff]  }
  0x90   :  { %974 = vmatprep.subr.bf16.mxu0 %v1589_v14  ;;  %1259 = vmatpush1.bf16.msra.mxu1 %v1728_v49  ;;  %v1660_v14 = vld [vmem:[#allocation5 + $0x364] ss:$8 sps:$4 sm:$0xff]   ;;  %v200_v49 = vlaneseq }
  0x91   :  { %1260 = vmatprep.subr.bf16.mxu1 %v1733_v50 }
  0x92   :  { %v201_v50 = vshrl.u32 %v200_v49, 7 }
  0x93   :  { %975 = vmatpush1.bf16.msra.mxu0 %v1587_v17  ;;  %v1658_v17 = vld [vmem:[#allocation5 + $0x360] ss:$8 sps:$4 sm:$0xff]  }
  0x94   :  { %976 = vmatprep.subr.bf16.mxu0 %v1592_v18  ;;  %1261 = vmatpush1.bf16.msra.mxu1 %v1731_v54  ;;  %v1666_v18 = vld [vmem:[#allocation5 + $0x374] ss:$8 sps:$4 sm:$0xff]   ;;  %v206_v53 = vsub.s32 1, %v201_v50 }
  0x95   :  { %1262 = vmatprep.subr.bf16.mxu1 %v1736_v56 }
  0x97   :  { %977 = vmatpush1.bf16.msra.mxu0 %v1590_v21  ;;  %v1672_v21 = vld [vmem:[#allocation5 + $0x384] ss:$8 sps:$4 sm:$0xff]  }
  0x98   :  { %978 = vmatprep.subr.bf16.mxu0 %v1595_v22  ;;  %1263 = vmatpush1.bf16.msra.mxu1 %v1734_v60  ;;  %v1670_v22 = vld [vmem:[#allocation5 + $0x380] ss:$8 sps:$4 sm:$0xff]  }
  0x99   :  { %1264 = vmatprep.subr.bf16.mxu1 %v1739_v61 }
  0x9b   :  { %979 = vmatpush1.bf16.msra.mxu0 %v1593_v25  ;;  %v1684_v25 = vld [vmem:[#allocation5 + $0x3a4] ss:$8 sps:$4 sm:$0xff]  }
  0x9c   :  { %980 = vmatprep.subr.bf16.mxu0 %v1598_v26  ;;  %1265 = vmatpush1.bf16.msra.mxu1 %v1737_v46  ;;  %v1682_v26 = vld [vmem:[#allocation5 + $0x3a0] ss:$8 sps:$4 sm:$0xff]  }
  0x9d   :  { %1266 = vmatprep.subr.bf16.mxu1 %v1742_v0 }
  0x9f   :  { %981 = vmatpush1.bf16.msra.mxu0 %v1596_v29  ;;  %v1696_v29 = vld [vmem:[#allocation5 + $0x3c4] ss:$8 sps:$4 sm:$0xff]  }
  0xa0   :  { %982 = vmatprep.subr.bf16.mxu0 %v1601_v30  ;;  %1267 = vmatpush1.bf16.msra.mxu1 %v1740_v3  ;;  %v1694_v30 = vld [vmem:[#allocation5 + $0x3c0] ss:$8 sps:$4 sm:$0xff]  }
  0xa1   :  { %1268 = vmatprep.subr.bf16.mxu1 %v1745_v4  ;;  %v1293_v3 = vld [vmem:[%s1961_s5] sm:$0x3] }
  0xa2   :  { %v1294_v4 = vunpack.c.l.bf16 %v1293_v3 }
  0xa3   :  { %983 = vmatpush1.bf16.msra.mxu0 %v1599_v34  ;;  %v1706_v34 = vld [vmem:[#allocation5 + $0x3e0] ss:$8 sps:$4 sm:$0xff]  }
  0xa4   :  { %984 = vmatprep.subr.bf16.mxu0 %v1604_v35  ;;  %1269 = vmatpush1.bf16.msra.mxu1 %v1743_v7  ;;  %v1713_v35 = vld [vmem:[#allocation5 + $0x3f4] ss:$8 sps:$4 sm:$0xff]  }
  0xa5   :  { %1270 = vmatprep.subr.bf16.mxu1 %v1748_v8 }
  0xa7   :  { %985 = vmatpush1.bf16.msra.mxu0 %v1602_v38  ;;  %v1755_v38 = vld [vmem:[#allocation7 + $0xd0] ss:$8 sps:$4 sm:$0xff]  }
  0xa8   :  { %986 = vmatprep.subr.bf16.mxu0 %v1607_v39  ;;  %1271 = vmatpush1.bf16.msra.mxu1 %v1746_v11  ;;  %v1757_v39 = vld [vmem:[#allocation7 + $0xd4] ss:$8 sps:$4 sm:$0xff]  }
  0xa9   :  { %1272 = vmatprep.subr.bf16.mxu1 %v1751_v12 }
  0xab   :  { %987 = vmatpush1.bf16.msra.mxu0 %v1605_v42  ;;  %v1763_v42 = vld [vmem:[#allocation7 + $0xf4] ss:$8 sps:$4 sm:$0xff]  }
  0xac   :  { %988 = vmatprep.subr.bf16.mxu0 %v1610_v43  ;;  %1273 = vmatpush1.bf16.msra.mxu1 %v1749_v15  ;;  %v1761_v43 = vld [vmem:[#allocation7 + $0xf0] ss:$8 sps:$4 sm:$0xff]  }
  0xad   :  { %1274 = vmatprep.subr.bf16.mxu1 %v1754_v16 }
  0xaf   :  { %989 = vmatpush1.bf16.msra.mxu0 %v1608_v47 }
  0xb0   :  { %990 = vmatprep.subr.bf16.mxu0 %v1616_v48  ;;  %1275 = vmatpush1.bf16.msra.mxu1 %v1752_v19 }
  0xb1   :  { %1276 = vmatprep.subr.bf16.mxu1 %v1757_v39 }
  0xb3   :  { %991 = vmatpush1.bf16.msra.mxu0 %v1614_v51  ;;  %v202_v51 = vsub.s32 0, %v201_v50 }
  0xb4   :  { %1001 = vmatprep.subr.bf16.mxu0 %v1624_v52  ;;  %1277 = vmatpush1.bf16.msra.mxu1 %v1755_v38  ;;  %v198_v52 = vld [vmem:[%s1958_s2] sm:$0x3] }
  0xb5   :  { %1278 = vmatprep.subr.bf16.mxu1 %v1760_v40  ;;  %v203_v54 = vrot.slane %v198_v52, %v202_v51  ;;  %v1299_v8 = vrot.slane %v1294_v4, %v202_v51 }
  0xb6   :  { %993 = vmatmul.mubr.bf16.vlgmr.msra.gmra.mrb[0].mxu0 %v1335_v55  ;;  %v207_v55 = vrot.slane %v198_v52, %v206_v53 }
  0xb7   :  { %1002 = vmatpush1.bf16.msra.mxu0 %v1622_v57  ;;  %1033 = vmatprep.mubr.bf16.mxu0 %v1338_v58 }
  0xb8   :  { %1003 = vmatprep.subr.bf16.mxu0 %v1630_v59  ;;  %1279 = vmatpush1.bf16.msra.mxu1 %v1758_v41 }
  0xb9   :  { %1280 = vmatprep.subr.bf16.mxu1 %v1763_v42 }
  0xbb   :  { %1004 = vmatpush1.bf16.msra.mxu0 %v1628_v62 }
  0xbc   :  { %1005 = vmatprep.subr.bf16.mxu0 %v1636_v63  ;;  %1281 = vmatpush1.bf16.msra.mxu1 %v1761_v43 }
  0xbf   :  { %1006 = vmatpush1.bf16.msra.mxu0 %v1634_v1 }
  0xc0   :  { %1007 = vmatprep.subr.bf16.mxu0 %v1642_v2 }
  0xc3   :  { %1008 = vmatpush1.bf16.msra.mxu0 %v1640_v5  ;;  %v1078_v5 = vld [vmem:[%s1960_s4] sm:$0x3] }
  0xc4   :  { %1009 = vmatprep.subr.bf16.mxu0 %v1648_v6  ;;  %v1302_v6 = vsub.s32 2, %v201_v50  ;;  %v1083_v7 = vrot.slane %v1078_v5, %v202_v51 }
  0xc7   :  { %1010 = vmatpush1.bf16.msra.mxu0 %v1646_v9  ;;  %v1087_v9 = vrot.slane %v1078_v5, %v206_v53 }
  0xc8   :  { %1011 = vmatprep.subr.bf16.mxu0 %v1654_v10  ;;  %v1303_v10 = vrot.slane %v1294_v4, %v1302_v6 }
  0xcb   :  { %1012 = vmatpush1.bf16.msra.mxu0 %v1652_v13 }
  0xcc   :  { %1013 = vmatprep.subr.bf16.mxu0 %v1660_v14  ;;  %v1309_v14 = vrot.slane %v1299_v8, %v202_v51 }
  0xcf   :  { %1014 = vmatpush1.bf16.msra.mxu0 %v1658_v17  ;;  %v1313_v17 = vrot.slane %v1303_v10, %v202_v51 }
  0xd0   :  { %1015 = vmatprep.subr.bf16.mxu0 %v1666_v18 }
  0xd3   :  { %1016 = vmatpush1.bf16.msra.mxu0 %v1664_v20 }
  0xd4   :  { %1017 = vmatprep.subr.bf16.mxu0 %v1672_v21 }
  0xd7   :  { %1018 = vmatpush1.bf16.msra.mxu0 %v1670_v22 }
  0xd8   :  { %1019 = vmatprep.subr.bf16.mxu0 %v1678_v23 }
  0xdb   :  { %1020 = vmatpush1.bf16.msra.mxu0 %v1676_v24  ;;  %v1320_v24 = vstv %s1962_s6 }
  0xdc   :  { %1021 = vmatprep.subr.bf16.mxu0 %v1684_v25 }
  0xdf   :  { %1022 = vmatpush1.bf16.msra.mxu0 %v1682_v26 }
  0xe0   :  { %1023 = vmatprep.subr.bf16.mxu0 %v1690_v27 }
  0xe3   :  { %1024 = vmatpush1.bf16.msra.mxu0 %v1688_v28 }
  0xe4   :  { %1025 = vmatprep.subr.bf16.mxu0 %v1696_v29 }
  0xe7   :  { %1026 = vmatpush1.bf16.msra.mxu0 %v1694_v30 }
  0xe8   :  { %1027 = vmatprep.subr.bf16.mxu0 %v1702_v31 }
  0xeb   :  { %1028 = vmatpush1.bf16.msra.mxu0 %v1700_v32 }
  0xec   :  { %1029 = vmatprep.subr.bf16.mxu0 %v1708_v33 }
  0xef   :  { %1030 = vmatpush1.bf16.msra.mxu0 %v1706_v34 }
  0xf0   :  { %1031 = vmatprep.subr.bf16.mxu0 %v1713_v35 }
  0xf3   :  { %1032 = vmatpush1.bf16.msra.mxu0 %v1711_v36 }
  0xf6   :  { %1034 = vmatmul.mubr.bf16.vlgmr.msra.gmra.mrb[0].mxu0 %v1337_v37 }
 0x152   :  { %v912_v44 = vpop.f32.mrb[0].mxu1 }
 0x153   :  { %v914_v45 = vpop.f32.mrb[1].mxu1  ;;  %v913_v56 = vadd.f32 %v912_v44, %v203_v54 }
 0x154   :  { %v916_v47 = vpop.f32.mrb[2].mxu1  ;;  %v915_v57 = vadd.f32 %v914_v45, %v207_v55 }
 0x155   :  { %v917_v48 = vpop.f32.mrb[3].mxu1 }
 0x1c9   :  { %v1035_v58 = vpop.f32.mrb[0].mxu0 }
 0x1ca   :  { %v1500_v59 = vadd.f32 %v1035_v58, %v913_v56  ;;  %v1037_v60 = vpop.f32.mrb[1].mxu0 }
 0x1cb   :  { %v1502_v61 = vadd.f32 %v1037_v60, %v915_v57  ;;  %v1039_v62 = vpop.f32.mrb[2].mxu0 }
 0x1cc   :  { %v1042_v63 = vmax.f32 %v1500_v59, 0.0  ;;  %v1040_v46 = vpop.f32.mrb[3].mxu0 }
 0x1cd   :  { %v1043_v0 = vmax.f32 %v1502_v61, 0.0 }
 0x1ce   :  { %v1044_v2 = vpack.c.bf16 %v1042_v63, %v1042_v63 }
 0x1cf   :  { %v1045_v1 = vpack.c.bf16 %v1043_v0, %v1043_v0 }
 0x1d1   :  { %1282 = vmatprep.mubr.bf16.mxu1 %v1045_v1 }
 0x1d2   :  { %1283 = vmatmul.mubr.bf16.vlgmr.msra.gmra.mrb[4].mxu1 %v1044_v2 }
 0x2a5   :  { %v1284_v11 = vpop.f32.mrb[4].mxu1 }
 0x2a6   :  { %v1285_v12 = vadd.f32 %v1284_v11, %v1083_v7  ;;  %v1286_v13 = vpop.f32.mrb[5].mxu1 }
 0x2a7   :  { %v1287_v15 = vadd.f32 %v1286_v13, %v1087_v9  ;;  %v1288_v16 = vpop.f32.mrb[6].mxu1 }
 0x2a8   :  { %v1291_v18 = vmax.f32 %v1285_v12, 0.0  ;;  %v1289_v19 = vpop.f32.mrb[7].mxu1 }
 0x2a9   :  { %v1292_v20 = vmax.f32 %v1287_v15, 0.0 }
 0x2aa   :  { %v1314_v21 = vmul.f32 %v1309_v14, %v1291_v18 }
 0x2ab   :  { %v1315_v22 = vmul.f32 %v1313_v17, %v1292_v20 }
 0x2ad   :  { %v1316_v23 = vadd.f32 %v1315_v22, %v1314_v21 }
 0x2af   :  { %1317 = vadd.xlane.f32.xlu0 %v1316_v23 }
 0x33c   :  { %v1318_v25 = vpop.xlane.xlu0 %1317 }
 0x33d   :  { %v1321_v26 = vadd.f32 %v1320_v24, %v1318_v25 }
 0x33f   :  { %1764 = vtanh.f32 %v1321_v26 }
 0x349   :  { %v1765_v27 = vpop.eup %1764 }
 0x34a   :  { %1324 = vst.msk [vmem:[%s1963_s7] sm:$0xff] %vm1323_vm0, %v1765_v27 }
 0x34b   :  { %1329 = vsyncpa [#allocation4], 1 }
 0x34c   :  { %1330 = vsyncpa [#allocation6], 1 }

</bundles_post_ra>
